<compile_context>
chip_gen: v7x
topology: tpu7x:2x2x1
jax: 0.10.0
libtpu: 0.0.40
codegen_flags: <defaults>
</compile_context>

<pallas_src>
import jax
import jax.numpy as jnp
from jax.experimental import pallas as pl
from jax.experimental.pallas import tpu as pltpu


def _attention_kernel(z_ref, w1_ref, b1_ref, w2_ref, out_ref, beta_ref):
    # z_ref: (TB, N, D)   w1_ref: (D, H)   b1_ref: (1, H)   w2_ref: (1, H)
    TB, N, D = z_ref.shape
    H = w1_ref.shape[1]

    z = z_ref[...].astype(jnp.float32)                          # (TB, N, D)

    # ---- Linear(in, hidden) + Tanh: one (TB*N, D) x (D, H) MXU matmul ------
    z2 = z.reshape(TB * N, D)                                   # sublane-aligned merge
    h = jnp.tanh(
        jnp.dot(z2, w1_ref[...], preferred_element_type=jnp.float32)
        + b1_ref[...]                                           # (1, H) broadcast
    )                                                           # (TB*N, H)
    h3 = h.reshape(TB, N, H)

    # ---- Linear(hidden, 1, bias=False): VPU multiply + lane reduce ---------
    logits = jnp.sum(h3 * w2_ref[...], axis=-1)                 # (TB, N), lane-dense

    # ---- softmax over the sequence axis (last axis in this layout) ---------
    m = jnp.max(logits, axis=-1, keepdims=True)                 # (TB, 1)
    e = jnp.exp(logits - m)                                     # (TB, N)
    beta = e * pl.reciprocal(jnp.sum(e, axis=-1, keepdims=True), approx=False)

    # ---- weighted sum over the sequence -------------------------------------
    out = jnp.sum(beta[:, :, None] * z, axis=1)                 # (TB, D)

    out_ref[...] = out.astype(out_ref.dtype)                    # (TB, D)
    beta_ref[...] = beta.astype(beta_ref.dtype)                 # (TB, N) lane-dense


def _pick_batch_tile(B):
    # Prefer sublane-aligned (multiple-of-8) tiles that leave >= 2 grid steps
    # so v7x can shard the parallel batch axis across its 2 TensorCores.
    for tb in (64, 32, 16, 8):
        if B % tb == 0 and B // tb >= 2:
            return tb
    for tb in (64, 32, 16, 8, 4, 2, 1):
        if B % tb == 0:
            return tb
    return 1


def attention_forward(z, w1, b1, w2_row):
    """z: [B, N, D] (f32 or bf16). w1: [D, H], b1: [1, H], w2_row: [1, H] (f32).
    Returns (out [B, D] f32, beta [B, N, 1] f32)."""
    B, N, D = z.shape
    H = w1.shape[1]
    TB = _pick_batch_tile(B)
    grid = (B // TB,)

    cost = pl.CostEstimate(
        flops=2 * B * N * D * H + 2 * B * N * H + 2 * B * N * D,
        transcendentals=B * N * H + B * N,
        bytes_accessed=(
            z.size * z.dtype.itemsize
            + (w1.size + b1.size + w2_row.size) * 4
            + B * D * 4
            + B * N * 4
        ),
    )

    out, beta = pl.pallas_call(
        _attention_kernel,
        out_shape=(
            jax.ShapeDtypeStruct((B, D), jnp.float32),
            jax.ShapeDtypeStruct((B, N), jnp.float32),   # lane-dense beta
        ),
        grid_spec=pltpu.PrefetchScalarGridSpec(
            num_scalar_prefetch=0,
            grid=grid,
            in_specs=[
                pl.BlockSpec((TB, N, D), lambda b: (b, 0, 0)),   # z: TB batch rows
                pl.BlockSpec((D, H), lambda b: (0, 0)),          # w1 (replicated)
                pl.BlockSpec((1, H), lambda b: (0, 0)),          # b1 (replicated)
                pl.BlockSpec((1, H), lambda b: (0, 0)),          # w2 row (replicated)
            ],
            out_specs=[
                pl.BlockSpec((TB, D), lambda b: (b, 0)),         # out
                pl.BlockSpec((TB, N), lambda b: (b, 0)),         # beta (B, N)
            ],
        ),
        compiler_params=pltpu.CompilerParams(
            dimension_semantics=("parallel",),
        ),
        cost_estimate=cost,
    )(z, w1, b1, w2_row)

    # Match the PyTorch module's beta shape [B, N, 1].
    return out, beta[:, :, None]


def _reference(z, w1, b1, w2_row):
    # Pure-JAX reference (same math, same bf16-quantized z).
    zf = z.astype(jnp.float32)
    h = jnp.tanh(jnp.einsum("bnd,dh->bnh", zf, w1) + b1)         # (B, N, H)
    logits = jnp.sum(h * w2_row, axis=-1, keepdims=True)         # (B, N, 1)
    beta = jax.nn.softmax(logits, axis=1)
    out = jnp.sum(beta * zf, axis=1)
    return out, beta


if __name__ == "__main__":
    # Small shapes consistent with the module: batch=16, seq=8, in_size=32, hidden=16.
    B, N, D, H = 16, 8, 32, 16

    key = jax.random.PRNGKey(0)
    kz, kw1, kb1, kw2 = jax.random.split(key, 4)

    z_f32 = jax.random.normal(kz, (B, N, D), dtype=jnp.float32)
    z = z_f32.astype(jnp.bfloat16)          # memory-bound kernel: feed bf16
    w1 = jax.random.normal(kw1, (D, H), dtype=jnp.float32) * (1.0 / D**0.5)
    b1 = jax.random.normal(kb1, (1, H), dtype=jnp.float32) * 0.1
    w2 = jax.random.normal(kw2, (1, H), dtype=jnp.float32) * (1.0 / H**0.5)

    out, beta = attention_forward(z, w1, b1, w2)
    out = jax.block_until_ready(out)
    beta = jax.block_until_ready(beta)

    ref_out, ref_beta = _reference(z, w1, b1, w2)
    assert out.shape == (B, D) and beta.shape == (B, N, 1)
    assert jnp.allclose(out, ref_out, atol=2e-5, rtol=2e-5)
    assert jnp.allclose(beta, ref_beta, atol=2e-5, rtol=2e-5)

    print("KERNEL_OK")
</pallas_src>

<mosaic_0001>
module attributes {stable_mosaic.version = 11 : i64} {
  func.func @_attention_kernel(%arg0: i32, %arg1: memref<8x8x32xbf16, #tpu.memory_space<vmem>>, %arg2: memref<32x16xf32, #tpu.memory_space<vmem>>, %arg3: memref<1x16xf32, #tpu.memory_space<vmem>>, %arg4: memref<1x16xf32, #tpu.memory_space<vmem>>, %arg5: memref<8x32xf32, #tpu.memory_space<vmem>>, %arg6: memref<8x8xf32, #tpu.memory_space<vmem>>) attributes {dimension_semantics = [#tpu.dimension_semantics<parallel>], iteration_bounds = array<i64: 2>, scalar_prefetch = 0 : i64, scratch_operands = 0 : i64, tpu.core_type = #tpu.core_type<tc>, window_params = [{transform_indices = @transform_0, window_bounds = array<i64: 8, 8, 32>}, {pipeline_mode = #tpu.pipeline_mode<synchronous>, transform_indices = @transform_1, window_bounds = array<i64: 32, 16>}, {pipeline_mode = #tpu.pipeline_mode<synchronous>, transform_indices = @transform_2, window_bounds = array<i64: 1, 16>}, {pipeline_mode = #tpu.pipeline_mode<synchronous>, transform_indices = @transform_3, window_bounds = array<i64: 1, 16>}, {transform_indices = @transform_4, window_bounds = array<i64: 8, 32>}, {transform_indices = @transform_5, window_bounds = array<i64: 8, 8>}]} {
    %c0 = arith.constant 0 : index
    %c0_0 = arith.constant 0 : index
    %c0_1 = arith.constant 0 : index
    %0 = vector.load %arg1[%c0, %c0_0, %c0_1] : memref<8x8x32xbf16, #tpu.memory_space<vmem>>, vector<8x8x32xbf16>
    %1 = arith.extf %0 : vector<8x8x32xbf16> to vector<8x8x32xf32>
    %2 = vector.shape_cast %1 : vector<8x8x32xf32> to vector<64x32xf32>
    %c0_2 = arith.constant 0 : index
    %c0_3 = arith.constant 0 : index
    %3 = vector.load %arg2[%c0_2, %c0_3] : memref<32x16xf32, #tpu.memory_space<vmem>>, vector<32x16xf32>
    %cst = arith.constant dense<0.000000e+00> : vector<64x16xf32>
    %4 = tpu.matmul %2, %3, %cst {dimension_numbers = #tpu.dot_dimension_numbers<[1], [0], [0], [1], [0, 0, 1, 1], [], []>} : vector<64x32xf32>, vector<32x16xf32>, vector<64x16xf32> -> vector<64x16xf32>
    %c0_4 = arith.constant 0 : index
    %c0_5 = arith.constant 0 : index
    %5 = vector.load %arg3[%c0_4, %c0_5] : memref<1x16xf32, #tpu.memory_space<vmem>>, vector<1x16xf32>
    %6 = vector.broadcast %5 : vector<1x16xf32> to vector<64x16xf32>
    %7 = arith.addf %4, %6 : vector<64x16xf32>
    %8 = math.tanh %7 : vector<64x16xf32>
    %9 = vector.shape_cast %8 : vector<64x16xf32> to vector<8x8x16xf32>
    %c0_6 = arith.constant 0 : index
    %c0_7 = arith.constant 0 : index
    %10 = vector.load %arg4[%c0_6, %c0_7] : memref<1x16xf32, #tpu.memory_space<vmem>>, vector<1x16xf32>
    %11 = vector.shape_cast %10 : vector<1x16xf32> to vector<1x1x16xf32>
    %12 = vector.broadcast %11 : vector<1x1x16xf32> to vector<8x8x16xf32>
    %13 = arith.mulf %9, %12 : vector<8x8x16xf32>
    %cst_8 = arith.constant dense<0.000000e+00> : vector<8x8xf32>
    %14 = vector.multi_reduction <add>, %13, %cst_8 [2] : vector<8x8x16xf32> to vector<8x8xf32>
    %cst_9 = arith.constant dense<0xFF800000> : vector<8xf32>
    %15 = vector.multi_reduction <maximumf>, %14, %cst_9 [1] : vector<8x8xf32> to vector<8xf32>
    %16 = vector.shape_cast %15 : vector<8xf32> to vector<8x1xf32>
    %17 = vector.broadcast %16 : vector<8x1xf32> to vector<8x8xf32>
    %18 = arith.subf %14, %17 : vector<8x8xf32>
    %19 = math.exp %18 : vector<8x8xf32>
    %cst_10 = arith.constant dense<0.000000e+00> : vector<8xf32>
    %20 = vector.multi_reduction <add>, %19, %cst_10 [1] : vector<8x8xf32> to vector<8xf32>
    %21 = vector.shape_cast %20 : vector<8xf32> to vector<8x1xf32>
    %22 = tpu.reciprocal %21 : vector<8x1xf32> -> vector<8x1xf32>
    %23 = vector.broadcast %22 : vector<8x1xf32> to vector<8x8xf32>
    %24 = arith.mulf %19, %23 : vector<8x8xf32>
    %25 = vector.shape_cast %24 : vector<8x8xf32> to vector<8x8x1xf32>
    %26 = vector.broadcast %25 : vector<8x8x1xf32> to vector<8x8x32xf32>
    %27 = arith.mulf %26, %1 : vector<8x8x32xf32>
    %cst_11 = arith.constant dense<0.000000e+00> : vector<8x32xf32>
    %28 = vector.multi_reduction <add>, %27, %cst_11 [1] : vector<8x8x32xf32> to vector<8x32xf32>
    %c0_12 = arith.constant 0 : index
    %c0_13 = arith.constant 0 : index
    %29 = vector.load %arg5[%c0_12, %c0_13] : memref<8x32xf32, #tpu.memory_space<vmem>>, vector<8x32xf32>
    tpu.vector_store %arg5[%c0_12, %c0_13], %28 {strides = array<i32>} : memref<8x32xf32, #tpu.memory_space<vmem>>, vector<8x32xf32>,
    %c0_14 = arith.constant 0 : index
    %c0_15 = arith.constant 0 : index
    %30 = vector.load %arg6[%c0_14, %c0_15] : memref<8x8xf32, #tpu.memory_space<vmem>>, vector<8x8xf32>
    tpu.vector_store %arg6[%c0_14, %c0_15], %24 {strides = array<i32>} : memref<8x8xf32, #tpu.memory_space<vmem>>, vector<8x8xf32>,
    return
  }
  func.func @transform_0(%arg0: i32) -> (i32, i32, i32) {
    %c0_i32 = arith.constant 0 : i32
    %c0_i32_0 = arith.constant 0 : i32
    %c0_i32_1 = arith.constant 0 : i32
    return %arg0, %c0_i32, %c0_i32_0 : i32, i32, i32
  }
  func.func @transform_1(%arg0: i32) -> (i32, i32) {
    %c0_i32 = arith.constant 0 : i32
    %c0_i32_0 = arith.constant 0 : i32
    %c0_i32_1 = arith.constant 0 : i32
    return %c0_i32, %c0_i32_0 : i32, i32
  }
  func.func @transform_2(%arg0: i32) -> (i32, i32) {
    %c0_i32 = arith.constant 0 : i32
    %c0_i32_0 = arith.constant 0 : i32
    %c0_i32_1 = arith.constant 0 : i32
    return %c0_i32, %c0_i32_0 : i32, i32
  }
  func.func @transform_3(%arg0: i32) -> (i32, i32) {
    %c0_i32 = arith.constant 0 : i32
    %c0_i32_0 = arith.constant 0 : i32
    %c0_i32_1 = arith.constant 0 : i32
    return %c0_i32, %c0_i32_0 : i32, i32
  }
  func.func @transform_4(%arg0: i32) -> (i32, i32) {
    %c0_i32 = arith.constant 0 : i32
    %c0_i32_0 = arith.constant 0 : i32
    return %arg0, %c0_i32 : i32, i32
  }
  func.func @transform_5(%arg0: i32) -> (i32, i32) {
    %c0_i32 = arith.constant 0 : i32
    %c0_i32_0 = arith.constant 0 : i32
    return %arg0, %c0_i32 : i32, i32
  }
}

</mosaic_0001>

<bundles_post_ra>
// kernel: tpu_custom_call.1
= control target key start
LH: loop header
LB: loop body
LE: loop exit
PB: predicated region body
PF: predicated region fallthrough
CT: control target
= control target key end

     0   :  { %11 = vsyncpa [#allocation3], 0  ;;  %s1654_s0 = inlined_call_operand.hbm [shape: bf16[16,8,32], index: 0, kind: input, shape index: {}]   ;;  %s1655_s1 = inlined_call_operand.vmem [shape: f32[32,16], index: 1, kind: input, shape index: {}]   ;;  %s1656_s2 = inlined_call_operand.vmem [shape: f32[1,16], index: 2, kind: input, shape index: {}]   ;;  %s1657_s3 = inlined_call_operand.vmem [shape: f32[1,16], index: 3, kind: input, shape index: {}]   ;;  %s1658_s4 = inlined_call_operand.hbm [shape: f32[16,32], index: 4, kind: output, shape index: {0}]   ;;  %s1659_s5 = inlined_call_operand.vmem [shape: f32[16,8], index: 5, kind: output, shape index: {1}]  }
   0x1   :  { %13 = vsyncpa [#allocation3 + $0x1], 0 }
   0x2   :  { %14 = vsyncpa [#allocation4], 0 }
   0x3   :  { %16 = vsyncpa [#allocation4 + $0x1], 0  ;;  %s1294_s18 = smov 0   ;;  %s1296_s19 = smov 0  }
   0x4   :  { %s1298_s20 = smov 0   ;;  %s1300_s21 = smov 0  }
   0x5 LB: > { %s1315_s22 = sadd.s32 4294967295, %s1257_s21   ;;  %s988_s23 = sadd.s32 4294967294, %s1257_s21   ;;  %s1257_s21 = sphi %s1300_s21, %s1672_s21   ;;  %s1253_s20 = sphi %s1298_s20, %s1671_s20   ;;  %s1249_s19 = sphi %s1296_s19, %s1670_s19   ;;  %s1245_s18 = sphi %s1294_s18, %s1669_s18  }
   0x6   : > { %s1319_s24 = sadd.s32 1, %s1257_s21   ;;  %s29_s25 = sadd.s32 1, %s1253_s20 }
   0x7   : > { %s26_s26 = ssub.s32 %s1257_s21, %s1319_s24  ;;  %p36_p0 = scmp.ne.s32.totalorder %s1253_s20, %s1249_s19 }
   0x8   : > { %p27_p1 = scmp.eq.s32.totalorder %s26_s26, 0  ;;  %p37_p2 = scmp.eq.s32.totalorder %s1257_s21, 0 }
   0x9   : > { %p42_p3 = scmp.ne.s32.totalorder %s1249_s19, %s1245_s18  ;;  %p43_p4 = scmp.eq.s32.totalorder %s1315_s22, 0 }
   0xa   : > { %s1331_s27 = scalar_select %p27_p1, %s1253_s20, %s29_s25  }
   0xb   : > { %p1333_p5 = por %p37_p2, %p36_p0  ;;  %p1337_p6 = por %p43_p4, %p42_p3 }
   0xc   : > { %p129_p7 = scmp.eq.s32.totalorder %s1315_s22, 1  ;;  %p135_p8 = scmp.eq.s32.totalorder %s988_s23, 1 }
   0xd   : > { %p1088_p10 = scmp.lt.s32.totalorder %s1257_s21, 2  ;;  %s190_s7 = sand.u32 1, %s1253_s20  }
   0xe   : > { %p1344_p11 = por %p129_p7, %p36_p0  ;;  %p1348_p12 = por %p135_p8, %p42_p3 }
   0xf   : > { %s1012_s8 = sshll.u32 %s1257_s21, 9  ;;  %s991_s9 = sshll.u32 %s190_s7, 5 }
  0x10   : > { %s1663_s30 = scalar_select %p1344_p11, 1, 0 }
  0x11   : > { %s1664_s6 = scalar_select %p1348_p12, 1, 0 }
  0x12   : > { %s1357_s12 = scalar_lea.hbm %s1654_s0, %s1012_s8  ;;  %s194_s13 = scalar_lea.vmem [#allocation2], %s991_s9 }
  0x13   : > { %s201_s14 = sshll.u32 %s194_s13, 4  ;;  %p1361_p13 = pnand %p1088_p10, %p1333_p5  ;;  %s1365_s14 = int_to_ptr.vmem [resolvable:$true] %s201_s14 }
  0x14   : > { %s1367_s16 = scalar_lea.sflag [#allocation3], %s190_s7  ;;  %s1161_s17 = scalar_lea.hbm %s1357_s12, 512 }
  0x15   : > { %p1162_p0 = scmp.ne.s32.totalorder %s1357_s12, %s1161_s17  ;;  %p1163_p1 = pneg %p1361_p13 }
  0x16   : > { %s1166_s26 = scalar_lea.hbm %s1654_s0, 1024  ;;  %p1167_p4 = scmp.lt.u32.totalorder %s1357_s12, %s1654_s0 }
  0x17   : > { %p1164_p2 = pnand %p1163_p1, %p1162_p0  ;;  %p1168_p5 = scmp.lt.u32.totalorder %s1166_s26, %s1161_s17 }
  0x18   : > { %p1170_p8 = scmp.lt.u32.totalorder %s1161_s17, %s1357_s12 }
  0x19   : > { %p1165_p3 = pneg %p1164_p2  ;;  %p1169_p7 = por %p1168_p5, %p1167_p4 }
  0x1b   : > { %p1171_p10 = por %p1170_p8, %p1169_p7 }
  0x1d   : > { %p1172_p9 = pnand %p1171_p10, %p1165_p3 }
  0x1f   : > { %1175 = shalt.err (!%p1172_p9)
}
  0x20   : > { %s1176_s7 = scalar_lea.vmem %s1365_s14, 512  ;;  %s1259_s9 = smov [#allocation2]  }
  0x21   : > { %p1177_p0 = scmp.ne.s32.totalorder %s1365_s14, %s1176_s7  ;;  %s1181_s10 = sshll.u32 %s1259_s9, 4  ;;  %s1182_s10 = int_to_ptr.vmem [resolvable:$false] %s1181_s10 }
  0x22   : > { %s1183_s11 = scalar_lea.vmem %s1182_s10, 1024  ;;  %p1184_p11 = scmp.lt.s32.totalorder %s1365_s14, %s1182_s10 }
  0x23   : > { %p1179_p2 = pnand %p1177_p0, %p1163_p1  ;;  %p1185_p4 = scmp.lt.s32.totalorder %s1183_s11, %s1176_s7 }
  0x25   : > { %p1180_p12 = pneg %p1179_p2  ;;  %p1186_p5 = por %p1185_p4, %p1184_p11 }
  0x27   : > { %p1187_p7 = pnand %p1186_p5, %p1180_p12 }
  0x29   : > { %1190 = shalt.err (!%p1187_p7)
}
  0x2a   : > { %s1260_s13 = smov 64   ;;  %s1261_s17 = smov 4  }
  0x2b   : > { %1083 = dma.hbm_to_vmem [thread:$0]  (!%p1361_p13), %s1357_s12, 512, %s1365_s14, %s1367_s16, %s1260_s13, %s1260_s13, %s1261_s17  }
  0x2c   : > { %p994_p9 = scmp.ge.s32.totalorder %s1257_s21, 1  ;;  %p209_p1 = scmp.lt.s32.totalorder %s1257_s21, 3 }
  0x2e   : > { %p210_p3 = pnand %p994_p9, %p209_p1 }
  0x2f   : > { %s1398_s23 = sand.u32 (!%p210_p3), 1, %s1249_s19  }
  0x30   : > { %213 = sbr.rel (%p210_p3) target bundleno = 1115 (0x45b), region = 36  ;;  %s995_s25 = sshll.u32 (!%p210_p3), %s1398_s23, 5 }
  0x31   : > { %s216_s26 = scalar_lea.sflag (!%p210_p3), [#allocation3], %s1398_s23  ;;  %s219_s28 = scalar_lea.vmem (!%p210_p3), [#allocation2], %s995_s25 }
  0x37   : > { %1236 = dma.done.wait (%p1337_p6), %s216_s26, 512  }
  0x38   : > { %1238 = vsyncadd (%p1337_p6), %s216_s26, 4294966784  ;;  %v271_v0 = vld [vmem:[%s1655_s1] sm:$0xff]  ;;  %v272_v1 = vld [vmem:[%s1655_s1 + $0x8] sm:$0xff]  ;;  %vm282_vm0 = vcmask 261120   ;;  %vm435_vm1 = vcmask 130048   ;;  %v468_v60 = vlaneseq  ;;  %vm502_vm2 = vcmask 1041409  }
  0x39   : > { %v273_v2 = vld [vmem:[%s1655_s1 + $0x10] sm:$0xff]  ;;  %v1064_v3 = vpack.c.bf16 %v272_v1, %v271_v0  ;;  %v274_v4 = vld [vmem:[%s1655_s1 + $0x18] sm:$0xff]  ;;  %v1418_v5 = vld [vmem:[%s219_s28] sm:$0xff]   ;;  %vm504_vm3 = vcmask 1042434   ;;  %vm506_vm4 = vcmask 1043459   ;;  %vm508_vm5 = vcmask 1044484  }
  0x3a   : > { %v1068_v6 = vpack.c.bf16 %v274_v4, %v273_v2  ;;  %v1015_v7 = vunpack.c.l.bf16 %v1418_v5  ;;  %v1421_v8 = vld [vmem:[%s219_s28 + $0x10] sm:$0xff]   ;;  %v1427_v10 = vld [vmem:[%s219_s28 + $0x8] sm:$0xff]   ;;  %v1432_v11 = vld [vmem:[%s219_s28 + $0x18] sm:$0xff]   ;;  %v1016_v12 = vunpack.c.h.bf16 %v1418_v5  ;;  %v469_v61 = vand.u32 127, %v468_v60  ;;  %p251_p6 = scmp.lt.s32.totalorder %s1315_s22, 1  ;;  %s996_s14 = sshll.u32 %s1398_s23, 3 }
  0x3b   : > { %1065 = vmatprep.subr.bf16.mxu0 %v1064_v3  ;;  %1072 = vmatprep.subr.bf16.mxu1 %v1064_v3  ;;  %v1023_v9 = vunpack.c.l.bf16 %v1421_v8  ;;  %v1019_v13 = vunpack.c.l.bf16 %v1427_v10  ;;  %v1024_v14 = vunpack.c.h.bf16 %v1421_v8  ;;  %v1027_v15 = vunpack.c.l.bf16 %v1432_v11  ;;  %v998_v18 = vld [vmem:[%s1656_s2] ss:$0 sm:$0xff]  ;;  %s1009_s16 = sshll.u32 %s1315_s22, 7  ;;  %s243_s8 = scalar_lea.vmem [#allocation5], %s996_s14 }
  0x3c   : > { %1067 = vmatpush3.bf16.msra.mxu0 %v1064_v3  ;;  %1052 = vmatprep.mubr.msk.f32.mxu0 %vm282_vm0, %v1015_v7  ;;  %v1020_v16 = vunpack.c.h.bf16 %v1427_v10  ;;  %v1028_v17 = vunpack.c.h.bf16 %v1432_v11  ;;  %v1007_v35 = vld [vmem:[%s1657_s3] ss:$0 sm:$0xff]  ;;  %v1472_v62 = vshrl.u32 %v468_v60, 7  ;;  %vm510_vm6 = vcmask 1045509   ;;  %s1571_s25 = scalar_select %p251_p6, %s1315_s22, 1 }
  0x3d   : > { %1069 = vmatprep.subr.bf16.mxu0 %v1068_v6  ;;  %1074 = vmatpush3.bf16.msra.mxu1 %v1064_v3  ;;  %vm512_vm7 = vcmask 1046534   ;;  %vm514_vm8 = vcmask 1047559   ;;  %vm517_vm9 = vcmask 64512   ;;  %s891_s7 = sshll.u32 %s243_s8, 4  ;;  %s1608_s29 = scalar_lea.hbm %s1658_s4, %s1009_s16  ;;  %s1610_s7 = int_to_ptr.vmem [resolvable:$true] %s891_s7 }
  0x3e   : > { %1073 = vmatprep.subr.bf16.mxu1 %v1068_v6  ;;  %1058 = vmatprep.mubr.msk.f32.mxu1 %vm282_vm0, %v1023_v9  ;;  %v1475_v0 = vsub.s32 %v469_v61, %v1472_v62  ;;  %v552_v60 = vsub.s32 7, %v1472_v62  ;;  %s997_s26 = sshll.u32 %s1571_s25, 3  ;;  %s874_s22 = scalar_lea.sflag [#allocation4], %s1398_s23 }
  0x3f   : > { %s254_s12 = scalar_lea.vmem %s1659_s5, %s997_s26  ;;  %s1191_s11 = scalar_lea.vmem %s1610_s7, 128 }
  0x40   : > { %1071 = vmatpush3.bf16.msra.mxu0 %v1068_v6  ;;  %p1192_p11 = scmp.ne.s32.totalorder %s1610_s7, %s1191_s11  ;;  %p1666_p12 = scmp.ne.s32.totalorder %s1663_s30, 0 }
  0x41   : > { %1075 = vmatpush3.bf16.msra.mxu1 %v1068_v6  ;;  %s1263_s13 = smov [#allocation5]  }
  0x42   : > { %p1193_p13 = pnand %p1192_p11, %p1666_p12  ;;  %s1195_s17 = sshll.u32 %s1263_s13, 4  ;;  %s1196_s17 = int_to_ptr.vmem [resolvable:$false] %s1195_s17 }
  0x43   : > { %1053 = vmatmul.mubr.msk.f32.vlgmr.msra.gmra.mrb[0].mxu0 %vm282_vm0, %v1016_v12  ;;  %s1197_s25 = scalar_lea.vmem %s1196_s17, 256  ;;  %p1198_p10 = scmp.lt.s32.totalorder %s1610_s7, %s1196_s17 }
  0x44   : > { %1055 = vmatprep.mubr.msk.f32.mxu0 %vm282_vm0, %v1019_v13  ;;  %1059 = vmatmul.mubr.msk.f32.vlgmr.msra.gmra.mrb[0].mxu1 %vm282_vm0, %v1024_v14  ;;  %p1194_p8 = pneg %p1193_p13  ;;  %p1199_p0 = scmp.lt.s32.totalorder %s1197_s25, %s1191_s11 }
  0x45   : > { %1061 = vmatprep.mubr.msk.f32.mxu1 %vm282_vm0, %v1027_v15 }
  0x46   : > { %p1200_p2 = por %p1199_p0, %p1198_p10 }
  0x47   : > { %1056 = vmatmul.mubr.msk.f32.gmra.mrb[2].mxu0 %vm282_vm0, %v1020_v16 }
  0x48   : > { %1062 = vmatmul.mubr.msk.f32.gmra.mrb[2].mxu1 %vm282_vm0, %v1028_v17  ;;  %p1201_p4 = pnand %p1200_p2, %p1194_p8 }
 0x116   : > { %v1054_v19 = vpop.f32.mrb[0].mxu0 }
 0x117   : > { %v379_v20 = vadd.f32 %v1054_v19, %v998_v18  ;;  %v373_v21 = vpop.f32.mrb[1].mxu0  ;;  %v1060_v22 = vpop.f32.mrb[0].mxu1 }
 0x118   : > { %v374_v23 = vadd.f32 %v998_v18, %v373_v21  ;;  %v393_v24 = vpop.f32.mrb[1].mxu1  ;;  %v399_v32 = vadd.f32 %v1060_v22, %v998_v18 }
 0x119   : > { %1127 = vtanh.f32 %v379_v20  ;;  %v394_v25 = vadd.f32 %v998_v18, %v393_v24 }
 0x11a   : > { %1129 = vtanh.f32 %v374_v23  ;;  %v1057_v26 = vpop.f32.mrb[2].mxu0 }
 0x11b   : > { %v389_v27 = vadd.f32 %v1057_v26, %v998_v18  ;;  %v383_v28 = vpop.f32.mrb[3].mxu0  ;;  %v1063_v29 = vpop.f32.mrb[2].mxu1  ;;  %1131 = vtanh.f32 %v394_v25 }
 0x11c   : > { %v384_v30 = vadd.f32 %v998_v18, %v383_v28  ;;  %v403_v31 = vpop.f32.mrb[3].mxu1  ;;  %v409_v34 = vadd.f32 %v1063_v29, %v998_v18 }
 0x11d   : > { %1133 = vtanh.f32 %v389_v27  ;;  %v404_v33 = vadd.f32 %v998_v18, %v403_v31 }
 0x11e   : > { %1135 = vtanh.f32 %v384_v30 }
 0x11f   : > { %1137 = vtanh.f32 %v404_v33 }
 0x120   : > { %1139 = vtanh.f32 %v399_v32 }
 0x121   : > { %1141 = vtanh.f32 %v409_v34 }
 0x123   : > { %v1128_v36 = vpop.eup %1127 }
 0x124   : > { %v1130_v37 = vpop.eup %1129  ;;  %v428_v38 = vmul.f32 %v1128_v36, %v1007_v35  ;;  %v1262_v36 = vmov 0  }
 0x125   : > { %v1132_v39 = vpop.eup %1131  ;;  %v427_v41 = vmul.f32 %v1130_v37, %v1007_v35  ;;  %1126 = vset.pattern.permute.xlu0 %v1262_v36  ;;  %1125 = vset.pattern.permute.xlu1 %v1262_v36  ;;  %v524_v37 = vsub.s32 0, %v1472_v62 }
 0x126   : > { %v439_v40 = vsel %vm435_vm1, %v428_v38, 0.0  ;;  %v431_v45 = vmul.f32 %v1132_v39, %v1007_v35  ;;  %v528_v38 = vsub.s32 1, %v1472_v62  ;;  %v532_v39 = vsub.s32 2, %v1472_v62 }
 0x127   : > { %v1134_v42 = vpop.eup %1133  ;;  %440 = vadd.xlane.f32.xlu0 %v439_v40  ;;  %v436_v48 = vsel %vm435_vm1, %v427_v41, 0.0  ;;  %v536_v40 = vsub.s32 3, %v1472_v62 }
 0x128   : > { %v1136_v43 = vpop.eup %1135  ;;  %v430_v44 = vmul.f32 %v1134_v42, %v1007_v35  ;;  %v448_v51 = vsel %vm435_vm1, %v431_v45, 0.0  ;;  %v540_v45 = vsub.s32 4, %v1472_v62 }
 0x129   : > { %v1138_v46 = vpop.eup %1137  ;;  %v429_v49 = vmul.f32 %v1136_v43, %v1007_v35 }
 0x12a   : > { %v445_v47 = vsel %vm435_vm1, %v430_v44, 0.0  ;;  %v1140_v50 = vpop.eup %1139  ;;  %v433_v52 = vmul.f32 %v1138_v46, %v1007_v35 }
 0x12b   : > { %446 = vadd.xlane.f32.xlu1 %v445_v47  ;;  %437 = vadd.xlane.f32.xlu0 %v436_v48  ;;  %v442_v53 = vsel %vm435_vm1, %v429_v49, 0.0  ;;  %v432_v54 = vmul.f32 %v1140_v50, %v1007_v35  ;;  %v1142_v55 = vpop.eup %1141 }
 0x12c   : > { %v454_v56 = vsel %vm435_vm1, %v433_v52, 0.0  ;;  %v434_v58 = vmul.f32 %v1142_v55, %v1007_v35  ;;  %v544_v52 = vsub.s32 5, %v1472_v62 }
 0x12d   : > { %v451_v57 = vsel %vm435_vm1, %v432_v54, 0.0 }
 0x12e   : > { %v457_v59 = vsel %vm435_vm1, %v434_v58, 0.0 }
 0x12f   : > { %443 = vadd.xlane.f32.xlu1 %v442_v53  ;;  %449 = vadd.xlane.f32.xlu0 %v448_v51 }
 0x133   : > { %452 = vadd.xlane.f32.xlu1 %v451_v57  ;;  %455 = vadd.xlane.f32.xlu0 %v454_v56  ;;  %v548_v56 = vsub.s32 6, %v1472_v62 }
 0x137   : > { %458 = vadd.xlane.f32.xlu1 %v457_v59 }
 0x1b4   : > { %v441_v63 = vpop.xlane.xlu0 %440 }
 0x1b5   : > { %v477_v4 = vrot.slane %v441_v63, %v1475_v0 }
 0x1b8   : > { %v447_v1 = vpop.xlane.xlu1 %446  ;;  %v438_v2 = vpop.xlane.xlu0 %437 }
 0x1b9   : > { %v473_v3 = vrot.slane %v438_v2, %v1475_v0  ;;  %v485_v21 = vrot.slane %v447_v1, %v1475_v0 }
 0x1bb   : > { %v503_v22 = vsel %vm502_vm2, %v477_v4, %v473_v3 }
 0x1bc   : > { %v444_v6 = vpop.xlane.xlu1 %443  ;;  %v450_v18 = vpop.xlane.xlu0 %449 }
 0x1bd   : > { %v481_v19 = vrot.slane %v444_v6, %v1475_v0  ;;  %v489_v20 = vrot.slane %v450_v18, %v1475_v0 }
 0x1bf   : > { %v505_v23 = vsel %vm504_vm3, %v481_v19, %v503_v22 }
 0x1c0   : > { %v507_v24 = vsel %vm506_vm4, %v485_v21, %v505_v23  ;;  %v453_v25 = vpop.xlane.xlu1 %452  ;;  %v456_v26 = vpop.xlane.xlu0 %455 }
 0x1c1   : > { %v509_v27 = vsel %vm508_vm5, %v489_v20, %v507_v24  ;;  %v493_v28 = vrot.slane %v453_v25, %v1475_v0  ;;  %v497_v29 = vrot.slane %v456_v26, %v1475_v0 }
 0x1c3   : > { %v511_v30 = vsel %vm510_vm6, %v493_v28, %v509_v27 }
 0x1c4   : > { %v459_v31 = vpop.xlane.xlu1 %458  ;;  %v513_v33 = vsel %vm512_vm7, %v497_v29, %v511_v30 }
 0x1c5   : > { %v501_v32 = vrot.slane %v459_v31, %v1475_v0 }
 0x1c7   : > { %v515_v34 = vsel %vm514_vm8, %v501_v32, %v513_v33 }
 0x1c8   : > { %v518_v35 = vsel %vm517_vm9, %v515_v34, -inf }
 0x1c9   : > { %519 = vmax.xlane.f32.xlu0 %v518_v35 }
 0x256   : > { %v520_v41 = vpop.xlane.xlu0 %519 }
 0x257   : > { %v525_v42 = vrot.slane %v520_v41, %v524_v37  ;;  %v529_v43 = vrot.slane %v520_v41, %v528_v38  ;;  %v533_v44 = vrot.slane %v520_v41, %v532_v39  ;;  %v537_v46 = vrot.slane %v520_v41, %v536_v40 }
 0x258   : > { %v541_v53 = vrot.slane %v520_v41, %v540_v45  ;;  %v545_v57 = vrot.slane %v520_v41, %v544_v52  ;;  %v549_v61 = vrot.slane %v520_v41, %v548_v56  ;;  %v553_v4 = vrot.slane %v520_v41, %v552_v60 }
 0x259   : > { %v562_v47 = vsub.f32 %v438_v2, %v525_v42  ;;  %v563_v48 = vsub.f32 %v441_v63, %v529_v43  ;;  %v564_v49 = vsub.f32 %v444_v6, %v533_v44  ;;  %v565_v54 = vsub.f32 %v447_v1, %v537_v46 }
 0x25a   : > { %v566_v58 = vsub.f32 %v450_v18, %v541_v53  ;;  %v567_v63 = vsub.f32 %v453_v25, %v545_v57  ;;  %v568_v6 = vsub.f32 %v456_v26, %v549_v61  ;;  %v569_v20 = vsub.f32 %v459_v31, %v553_v4 }
 0x25b   : > { %v570_v50 = vmul.f32 1.442695, %v562_v47  ;;  %v572_v51 = vmul.f32 1.442695, %v563_v48  ;;  %v574_v55 = vmul.f32 1.442695, %v564_v49 }
 0x25c   : > { %v576_v59 = vmul.f32 1.442695, %v565_v54  ;;  %v578_v2 = vmul.f32 1.442695, %v566_v58  ;;  %v580_v19 = vmul.f32 1.442695, %v567_v63 }
 0x25d   : > { %1143 = vpow2.f32 %v570_v50  ;;  %v582_v21 = vmul.f32 1.442695, %v568_v6  ;;  %v584_v23 = vmul.f32 1.442695, %v569_v20 }
 0x25e   : > { %1145 = vpow2.f32 %v572_v51 }
 0x25f   : > { %1147 = vpow2.f32 %v574_v55 }
 0x260   : > { %1149 = vpow2.f32 %v576_v59 }
 0x261   : > { %1151 = vpow2.f32 %v578_v2 }
 0x262   : > { %1153 = vpow2.f32 %v580_v19 }
 0x263   : > { %1155 = vpow2.f32 %v582_v21 }
 0x264   : > { %1157 = vpow2.f32 %v584_v23 }
 0x267   : > { %v1144_v1 = vpop.eup %1143 }
 0x268   : > { %v1146_v3 = vpop.eup %1145  ;;  %595 = vperm.xlu1 %1125, %v1144_v1  }
 0x269   : > { %598 = vperm.xlu0 %1126, %v1146_v3   ;;  %v1148_v18 = vpop.eup %1147 }
 0x26a   : > { %v1150_v22 = vpop.eup %1149 }
 0x26b   : > { %v1152_v24 = vpop.eup %1151 }
 0x26c   : > { %601 = vperm.xlu1 %1125, %v1148_v18   ;;  %v1154_v25 = vpop.eup %1153 }
 0x26d   : > { %v1156_v27 = vpop.eup %1155 }
 0x26e   : > { %v1158_v26 = vpop.eup %1157 }
 0x270   : > { %604 = vperm.xlu1 %1125, %v1150_v22  }
 0x274   : > { %607 = vperm.xlu1 %1125, %v1152_v24  }
 0x278   : > { %610 = vperm.xlu1 %1125, %v1154_v25  }
 0x27c   : > { %613 = vperm.xlu1 %1125, %v1156_v27  }
 0x280   : > { %616 = vperm.xlu1 %1125, %v1158_v26  }
 0x2e7   : > { %v596_v28 = vpop.permute.xlu1 %595 }
 0x2e8   : > { %v599_v31 = vpop.permute.xlu0 %598  ;;  %v621_v35 = vrot.slane %v596_v28, %v1475_v0 }
 0x2e9   : > { %v625_v34 = vrot.slane %v599_v31, %v1475_v0 }
 0x2eb   : > { %v602_v29 = vpop.permute.xlu1 %601  ;;  %v650_v44 = vsel %vm502_vm2, %v625_v34, %v621_v35 }
 0x2ec   : > { %v629_v36 = vrot.slane %v602_v29, %v1475_v0 }
 0x2ee   : > { %v651_v47 = vsel %vm504_vm3, %v629_v36, %v650_v44 }
 0x2ef   : > { %v605_v30 = vpop.permute.xlu1 %604 }
 0x2f0   : > { %v633_v41 = vrot.slane %v605_v30, %v1475_v0 }
 0x2f2   : > { %v652_v49 = vsel %vm506_vm4, %v633_v41, %v651_v47 }
 0x2f3   : > { %v608_v32 = vpop.permute.xlu1 %607 }
 0x2f4   : > { %v637_v42 = vrot.slane %v608_v32, %v1475_v0 }
 0x2f6   : > { %v653_v50 = vsel %vm508_vm5, %v637_v42, %v652_v49 }
 0x2f7   : > { %v611_v33 = vpop.permute.xlu1 %610 }
 0x2f8   : > { %v641_v46 = vrot.slane %v611_v33, %v1475_v0 }
 0x2fa   : > { %v654_v53 = vsel %vm510_vm6, %v641_v46, %v653_v50 }
 0x2fb   : > { %v614_v43 = vpop.permute.xlu1 %613 }
 0x2fc   : > { %v645_v48 = vrot.slane %v614_v43, %v1475_v0 }
 0x2fe   : > { %v655_v55 = vsel %vm512_vm7, %v645_v48, %v654_v53 }
 0x2ff   : > { %v617_v51 = vpop.permute.xlu1 %616 }
 0x300   : > { %v649_v54 = vrot.slane %v617_v51, %v1475_v0 }
 0x302   : > { %v656_v57 = vsel %vm514_vm8, %v649_v54, %v655_v55 }
 0x303   : > { %v658_v58 = vsel %vm517_vm9, %v656_v57, 0.0 }
 0x304   : > { %659 = vadd.xlane.f32.xlu1 %v658_v58 }
 0x391   : > { %v660_v59 = vpop.xlane.xlu1 %659 }
 0x392   : > { %1159 = vrcp.f32 %v660_v59 }
 0x39c   : > { %v1160_v61 = vpop.eup %1159 }
 0x39d   : > { %v666_v63 = vrot.slane %v1160_v61, %v524_v37  ;;  %v670_v4 = vrot.slane %v1160_v61, %v528_v38  ;;  %v674_v19 = vrot.slane %v1160_v61, %v532_v39  ;;  %v678_v21 = vrot.slane %v1160_v61, %v536_v40 }
 0x39e   : > { %v682_v28 = vrot.slane %v1160_v61, %v540_v45  ;;  %v686_v38 = vrot.slane %v1160_v61, %v544_v52  ;;  %v690_v39 = vrot.slane %v1160_v61, %v548_v56  ;;  %v694_v40 = vrot.slane %v1160_v61, %v552_v60 }
 0x39f   : > { %v703_v2 = vmul.f32 %v1144_v1, %v666_v63  ;;  %v704_v6 = vmul.f32 %v1146_v3, %v670_v4  ;;  %v705_v20 = vmul.f32 %v1148_v18, %v674_v19  ;;  %v706_v23 = vmul.f32 %v1150_v22, %v678_v21 }
 0x3a0   : > { %v707_v37 = vmul.f32 %v1152_v24, %v682_v28  ;;  %v708_v1 = vmul.f32 %v1154_v25, %v686_v38  ;;  %v709_v3 = vmul.f32 %v1156_v27, %v690_v39  ;;  %v710_v18 = vmul.f32 %v1158_v26, %v694_v40 }
 0x3a1   : > { %713 = vperm.xlu0 %1126, %v703_v2  }
 0x3a5   : > { %718 = vperm.xlu0 %1126, %v704_v6  }
 0x3a9   : > { %723 = vperm.xlu0 %1126, %v705_v20  }
 0x3ad   : > { %728 = vperm.xlu0 %1126, %v706_v23  }
 0x3b1   : > { %733 = vperm.xlu0 %1126, %v707_v37  }
 0x3b5   : > { %738 = vperm.xlu0 %1126, %v708_v1  }
 0x3b9   : > { %743 = vperm.xlu0 %1126, %v709_v3  }
 0x3bd   : > { %748 = vperm.xlu0 %1126, %v710_v18  }
 0x420   : > { %v714_v22 = vpop.permute.xlu0 %713 }
 0x421   : > { %v751_v52 = vmul.f32 %v1015_v7, %v714_v22  ;;  %v835_v44 = vrot.slane %v714_v22, %v1475_v0 }
 0x423   : > { %v759_v62 = vsel %vm282_vm0, %v751_v52, 0.0 }
 0x424   : > { %v719_v45 = vpop.permute.xlu0 %718 }
 0x425   : > { %v752_v24 = vmul.f32 %v1016_v12, %v719_v45  ;;  %v760_v12 = vrot.slane %v759_v62, 4  ;;  %v839_v42 = vrot.slane %v719_v45, %v1475_v0 }
 0x427   : > { %v766_v27 = vsel %vm282_vm0, %v752_v24, 0.0  ;;  %v761_v34 = vadd.f32 %v760_v12, %v759_v62  ;;  %v864_v55 = vsel %vm502_vm2, %v839_v42, %v835_v44 }
 0x428   : > { %v724_v25 = vpop.permute.xlu0 %723  ;;  %v767_v30 = vrot.slane %v766_v27, 4 }
 0x429   : > { %v753_v56 = vmul.f32 %v1019_v13, %v724_v25  ;;  %v843_v47 = vrot.slane %v724_v25, %v1475_v0  ;;  %v762_v48 = vrot.slane %v761_v34, 2 }
 0x42a   : > { %v768_v33 = vadd.f32 %v767_v30, %v766_v27 }
 0x42b   : > { %v773_v60 = vsel %vm282_vm0, %v753_v56, 0.0  ;;  %v865_v63 = vsel %vm504_vm3, %v843_v47, %v864_v55  ;;  %v763_v6 = vadd.f32 %v762_v48, %v761_v34 }
 0x42c   : > { %v729_v26 = vpop.permute.xlu0 %728  ;;  %v774_v32 = vrot.slane %v773_v60, 4  ;;  %v769_v46 = vrot.slane %v768_v33, 2 }
 0x42d   : > { %v754_v29 = vmul.f32 %v1020_v16, %v729_v26  ;;  %v847_v50 = vrot.slane %v729_v26, %v1475_v0  ;;  %v764_v27 = vrot.slane %v763_v6, 1 }
 0x42e   : > { %v775_v35 = vadd.f32 %v774_v32, %v773_v60  ;;  %v770_v61 = vadd.f32 %v769_v46, %v768_v33 }
 0x42f   : > { %v780_v5 = vsel %vm282_vm0, %v754_v29, 0.0  ;;  %v866_v20 = vsel %vm506_vm4, %v847_v50, %v865_v63  ;;  %v765_v32 = vadd.f32 %v764_v27, %v763_v6 }
 0x430   : > { %v781_v7 = vrot.slane %v780_v5, 4  ;;  %v734_v31 = vpop.permute.xlu0 %733  ;;  %v776_v49 = vrot.slane %v775_v35, 2  ;;  %v771_v18 = vrot.slane %v770_v61, 1 }
 0x431   : > { %v755_v13 = vmul.f32 %v1023_v9, %v734_v31  ;;  %v851_v54 = vrot.slane %v734_v31, %v1475_v0 }
 0x432   : > { %v782_v41 = vadd.f32 %v781_v7, %v780_v5  ;;  %v777_v19 = vadd.f32 %v776_v49, %v775_v35 }
 0x433   : > { %v787_v36 = vsel %vm282_vm0, %v755_v13, 0.0  ;;  %v867_v28 = vsel %vm508_vm5, %v851_v54, %v866_v20 }
 0x434   : > { %v788_v10 = vrot.slane %v787_v36, 4  ;;  %v739_v16 = vpop.permute.xlu0 %738  ;;  %v783_v53 = vrot.slane %v782_v41, 2  ;;  %v778_v52 = vrot.slane %v777_v19, 1 }
 0x435   : > { %v756_v43 = vmul.f32 %v1024_v14, %v739_v16  ;;  %v855_v58 = vrot.slane %v739_v16, %v1475_v0 }
 0x436   : > { %v789_v9 = vadd.f32 %v788_v10, %v787_v36  ;;  %v784_v23 = vadd.f32 %v783_v53, %v782_v41  ;;  %v779_v12 = vadd.f32 %v778_v52, %v777_v19 }
 0x437   : > { %v794_v51 = vsel %vm282_vm0, %v756_v43, 0.0  ;;  %v868_v39 = vsel %vm510_vm6, %v855_v58, %v867_v28 }
 0x438   : > { %v795_v8 = vrot.slane %v794_v51, 4  ;;  %v744_v14 = vpop.permute.xlu0 %743  ;;  %v790_v57 = vrot.slane %v789_v9, 2  ;;  %v785_v62 = vrot.slane %v784_v23, 1 }
 0x439   : > { %v757_v59 = vmul.f32 %v1027_v15, %v744_v14  ;;  %v859_v4 = vrot.slane %v744_v14, %v1475_v0 }
 0x43a   : > { %v796_v2 = vadd.f32 %v795_v8, %v794_v51  ;;  %v791_v15 = vadd.f32 %v790_v57, %v789_v9  ;;  %v786_v5 = vadd.f32 %v785_v62, %v784_v23 }
 0x43b   : > { %v801_v21 = vsel %vm282_vm0, %v757_v59, 0.0  ;;  %v869_v24 = vsel %vm512_vm7, %v859_v4, %v868_v39 }
 0x43c   : > { %v797_v37 = vrot.slane %v796_v2, 2  ;;  %v802_v38 = vrot.slane %v801_v21, 4  ;;  %v749_v1 = vpop.permute.xlu0 %748  ;;  %v792_v11 = vrot.slane %v791_v15, 1 }
 0x43d   : > { %v758_v3 = vmul.f32 %v1028_v17, %v749_v1  ;;  %v863_v40 = vrot.slane %v749_v1, %v1475_v0  ;;  %v772_v17 = vadd.f32 %v771_v18, %v770_v61 }
 0x43e   : > { %v798_v22 = vadd.f32 %v797_v37, %v796_v2  ;;  %v803_v45 = vadd.f32 %v802_v38, %v801_v21  ;;  %v793_v13 = vadd.f32 %v792_v11, %v791_v15 }
 0x43f   : > { %v808_v25 = vsel %vm282_vm0, %v758_v3, 0.0  ;;  %v870_v56 = vsel %vm514_vm8, %v863_v40, %v869_v24  ;;  %v823_v33 = vsel %vm502_vm2, %v772_v17, %v765_v32 }
 0x440   : > { %v804_v60 = vrot.slane %v803_v45, 2  ;;  %v809_v26 = vrot.slane %v808_v25, 4  ;;  %872 = vst.msk [vmem:[%s254_s12] sm:$0xff] %vm517_vm9, %v870_v56  ;;  %v799_v0 = vrot.slane %v798_v22, 1  ;;  %v824_v36 = vsel %vm504_vm3, %v779_v12, %v823_v33 }
 0x441   : > { %v825_v10 = vsel %vm506_vm4, %v786_v5, %v824_v36 }
 0x442   : > { %v805_v29 = vadd.f32 %v804_v60, %v803_v45  ;;  %v810_v30 = vadd.f32 %v809_v26, %v808_v25  ;;  %v800_v34 = vadd.f32 %v799_v0, %v798_v22  ;;  %v826_v42 = vsel %vm508_vm5, %v793_v13, %v825_v10 }
 0x444   : > { %v806_v7 = vrot.slane %v805_v29, 1  ;;  %v811_v31 = vrot.slane %v810_v30, 2  ;;  %v827_v43 = vsel %vm510_vm6, %v800_v34, %v826_v42 }
 0x446   : > { %v812_v35 = vadd.f32 %v811_v31, %v810_v30  ;;  %v807_v41 = vadd.f32 %v806_v7, %v805_v29 }
 0x448   : > { %v813_v16 = vrot.slane %v812_v35, 1  ;;  %v828_v46 = vsel %vm512_vm7, %v807_v41, %v827_v43 }
 0x44a   : > { %v814_v44 = vadd.f32 %v813_v16, %v812_v35 }
 0x44c   : > { %v829_v47 = vsel %vm514_vm8, %v814_v44, %v828_v46 }
 0x44d   : > { %831 = vst.msk [vmem:[%s243_s8] sm:$0xff] %vm282_vm0, %v829_v47 }
 0x44e   : > { %1204 = shalt.err (!%p1201_p4)
}
 0x44f   : > { %s1205_s23 = scalar_lea.hbm %s1608_s29, 128  ;;  %s1209_s15 = scalar_lea.hbm %s1658_s4, 256 }
 0x450   : > { %p1206_p5 = scmp.ne.s32.totalorder %s1608_s29, %s1205_s23  ;;  %p1210_p1 = scmp.lt.u32.totalorder %s1608_s29, %s1658_s4 }
 0x451   : > { %p1211_p3 = scmp.lt.u32.totalorder %s1209_s15, %s1205_s23  ;;  %p1213_p11 = scmp.lt.u32.totalorder %s1205_s23, %s1608_s29 }
 0x452   : > { %p1207_p7 = pnand %p1206_p5, %p1666_p12 }
 0x453   : > { %p1212_p6 = por %p1211_p3, %p1210_p1 }
 0x454   : > { %p1208_p9 = pneg %p1207_p7 }
 0x455   : > { %p1214_p13 = por %p1213_p11, %p1212_p6 }
 0x457   : > { %p1215_p8 = pnand %p1214_p13, %p1208_p9 }
 0x459   : > { %1218 = shalt.err (!%p1215_p8)
}
 0x45a   : > { %1078 = dma.vmem_to_hbm [thread:$0]  (%p1666_p12), %s1610_s7, 128, %s1608_s29, %s874_s22  }
 0x45b PF: > { %s906_s16 = sand.u32 1, %s1245_s18   ;;  %p1667_p10 = scmp.ne.s32.totalorder %s1664_s6, 0 }
 0x45c   : > { %p1668_p0 = scmp.ge.s32.totalorder %s1257_s21, 2  ;;  %s907_s8 = scalar_lea.sflag [#allocation4], %s906_s16 }
 0x45e   : > { %p1085_p2 = pnand %p1668_p0, %p1667_p10 }
 0x460   : > { %1240 = dma.done.wait (!%p1085_p2), %s907_s8, 128  }
 0x461   : > { %1242 = vsyncadd (!%p1085_p2), %s907_s8, 4294967168  ;;  %p19_p4 = scmp.ge.s32.totalorder %s1319_s24, 4   ;;  %s1669_s18 = smov %s1249_s19 }
 0x462   : > { %s1670_s19 = smov %s1253_s20  ;;  %s1671_s20 = smov %s1331_s27 }
 0x463   : > { %s1672_s21 = smov %s1319_s24  ;;  %21 = sbr.rel (!%p19_p4) target bundleno = 5 (0x5), region = 93 }
 0x46a   :  { %919 = vsyncpa [#allocation3], 1 }
 0x46b   :  { %921 = vsyncpa [#allocation3 + $0x1], 1 }
 0x46c   :  { %922 = vsyncpa [#allocation4], 1 }
 0x46d   :  { %924 = vsyncpa [#allocation4 + $0x1], 1 }

</bundles_post_ra>
